<compile_context>
chip_gen: v7x
topology: tpu7x:2x2x1
jax: 0.10.0
libtpu: 0.0.40
codegen_flags: <defaults>
</compile_context>

<pallas_src>
import functools

import jax
import jax.numpy as jnp
from jax import lax
from jax.experimental import pallas as pl
from jax.experimental.pallas import tpu as pltpu


def _round_up(x, m):
    return (x + m - 1) // m * m


def _normalize_kernel(f_ref, o_ref):
    """Row-wise L2 normalization: F.normalize(x, p=2, dim=1).

    max(||x||, 1e-12) == sqrt(max(sum(x^2), 1e-24)), so rsqrt on the EUP plus a
    multiply reproduces the PyTorch eps semantics exactly.
    """
    f = f_ref[...].astype(jnp.float32)
    ssq = jnp.sum(f * f, axis=1, keepdims=True)
    inv = lax.rsqrt(jnp.maximum(ssq, 1e-24))
    o_ref[...] = (f * inv).astype(o_ref.dtype)


def _sim_loss_kernel(rf_ref, cf_ref, lr_ref, lc_ref, out_ref, *, margin, n, tm, tn):
    """One (TM, TN) tile of the similarity matrix -> partial loss sums.

    out_ref is a (1, 1, 128) f32 block, resident across the column-tile axis:
      lane 0: sum of sim over positive (same-label) valid pairs
      lane 1: sum of clamp(margin - sim, 0) over negative valid pairs
      lane 2: count of positive valid pairs
    """
    i = pl.program_id(0)
    j = pl.program_id(1)

    @pl.when(j == 0)
    def _():
        out_ref[...] = jnp.zeros_like(out_ref)

    # Cosine-similarity tile on the MXU: bf16 operands, f32 accumulation,
    # contraction over the last dim of both operands (no transpose needed).
    sim = lax.dot_general(
        rf_ref[...],
        cf_ref[...],
        dimension_numbers=(((1,), (1,)), ((), ())),
        preferred_element_type=jnp.float32,
    )  # (tm, tn) f32

    lab_r = lr_ref[...]  # (tm, 1) int32
    lab_c = lc_ref[...]  # (1, tn) int32

    # Mask out zero-padded rows / columns (padding makes tiles lane/tile sized).
    row_idx = i * tm + lax.broadcasted_iota(jnp.int32, (tm, tn), 0)
    col_idx = j * tn + lax.broadcasted_iota(jnp.int32, (tm, tn), 1)
    valid = (row_idx < n) & (col_idx < n)

    pos_mask = valid & (lab_r == lab_c)
    neg_mask = valid & (lab_r != lab_c)

    sum_pos = jnp.sum(jnp.where(pos_mask, sim, 0.0))
    hinge = jnp.maximum(margin - sim, 0.0)
    sum_neg = jnp.sum(jnp.where(neg_mask, hinge, 0.0))
    cnt_pos = jnp.sum(pos_mask.astype(jnp.float32))

    lane = lax.broadcasted_iota(jnp.int32, out_ref.shape, 2)
    upd = jnp.where(
        lane == 0,
        sum_pos,
        jnp.where(lane == 1, sum_neg, jnp.where(lane == 2, cnt_pos, 0.0)),
    )
    out_ref[...] += upd


def contrastive_loss_cosine_similarity(features, labels, margin=0.5,
                                       block_m=256, block_n=256):
    """Pallas-TPU equivalent of ContrastiveLossCosineSimilarity.forward."""
    n, d = features.shape
    labels = labels.reshape(-1).astype(jnp.int32)

    # Tile sizes: full array when small, 256x256 otherwise (fits comfortably in
    # the 32 MiB scoped-VMEM budget on all generations, incl. v7x's 64 MiB).
    tm = min(block_m, _round_up(n, 8))
    tn = min(block_n, _round_up(n, 8))
    n_pad = _round_up(n, max(tm, tn))
    d_pad = _round_up(d, 128)  # keep lanes full and MXU operands vreg-aligned

    feats_p = jnp.pad(features, ((0, n_pad - n), (0, d_pad - d)))
    lab_p = jnp.pad(labels, (0, n_pad - n))
    lab_col = lab_p.reshape(n_pad, 1)
    lab_row = lab_p.reshape(1, n_pad)

    grid_rows = n_pad // tm
    grid_cols = n_pad // tn

    # Pass 1: normalize rows once (rsqrt on the EUP), emit bf16 for the MXU.
    feats_n = pl.pallas_call(
        _normalize_kernel,
        out_shape=jax.ShapeDtypeStruct((n_pad, d_pad), jnp.bfloat16),
        grid=(grid_rows,),
        in_specs=[pl.BlockSpec((tm, d_pad), lambda i: (i, 0))],
        out_specs=pl.BlockSpec((tm, d_pad), lambda i: (i, 0)),
        compiler_params=pltpu.CompilerParams(
            dimension_semantics=("parallel",),
            vmem_limit_bytes=32 * 1024 * 1024,
        ),
        cost_estimate=pl.CostEstimate(
            flops=3 * n_pad * d_pad,
            transcendentals=n_pad,
            bytes_accessed=n_pad * d_pad * 6,
        ),
    )(feats_p)

    # Pass 2: tiled similarity + masked hinge loss partial sums.
    kernel = functools.partial(
        _sim_loss_kernel, margin=float(margin), n=n, tm=tm, tn=tn
    )
    partial_sums = pl.pallas_call(
        kernel,
        out_shape=jax.ShapeDtypeStruct((grid_rows, 1, 128), jnp.float32),
        grid=(grid_rows, grid_cols),
        in_specs=[
            pl.BlockSpec((tm, d_pad), lambda i, j: (i, 0)),  # row feature tile
            pl.BlockSpec((tn, d_pad), lambda i, j: (j, 0)),  # col feature tile
            pl.BlockSpec((tm, 1), lambda i, j: (i, 0)),      # row labels
            pl.BlockSpec((1, tn), lambda i, j: (0, j)),      # col labels
        ],
        out_specs=pl.BlockSpec((1, 1, 128), lambda i, j: (i, 0, 0)),
        compiler_params=pltpu.CompilerParams(
            dimension_semantics=("parallel", "arbitrary"),
            vmem_limit_bytes=32 * 1024 * 1024,
        ),
        cost_estimate=pl.CostEstimate(
            flops=2 * n_pad * n_pad * d_pad,
            transcendentals=0,
            bytes_accessed=2 * n_pad * d_pad * 2 + 2 * n_pad * 4
            + grid_rows * 128 * 4,
        ),
    )(feats_n, feats_n, lab_col, lab_row)

    sum_pos = jnp.sum(partial_sums[:, 0, 0])
    sum_neg = jnp.sum(partial_sums[:, 0, 1])
    cnt_pos = jnp.sum(partial_sums[:, 0, 2])
    cnt_neg = jnp.float32(n * n) - cnt_pos

    return sum_pos / cnt_pos + sum_neg / cnt_neg


def _reference_loss(features, labels, margin=0.5):
    # Pure-JAX reference mirroring the PyTorch module (f32 end to end).
    norm = jnp.sqrt(jnp.sum(features * features, axis=1, keepdims=True))
    fn = features / jnp.maximum(norm, 1e-12)
    sim = fn @ fn.T
    mask_pos = labels[:, None] == labels[None, :]
    mask_neg = ~mask_pos
    loss_pos = jnp.sum(jnp.where(mask_pos, sim, 0.0)) / jnp.sum(mask_pos)
    hinge = jnp.maximum(margin - sim, 0.0)
    loss_neg = jnp.sum(jnp.where(mask_neg, hinge, 0.0)) / jnp.sum(mask_neg)
    return loss_pos + loss_neg


if __name__ == "__main__":
    key = jax.random.PRNGKey(0)
    N, D = 8, 32  # small batch of 8 samples with 32-dim features

    features = jax.random.normal(key, (N, D), dtype=jnp.float32)
    # two classes of 4 samples each -> every row has 4 positives / 4 negatives
    labels = jnp.array([0, 0, 0, 0, 1, 1, 1, 1], dtype=jnp.int32)

    loss = contrastive_loss_cosine_similarity(features, labels, margin=0.5)
    loss = jax.block_until_ready(loss)

    ref = _reference_loss(features, labels, margin=0.5)
    # bf16 MXU operands (f32 accumulation) introduce ~1e-3-level relative error
    # in the cosine similarities, so the tolerance is loosened accordingly.
    assert jnp.allclose(loss, ref, atol=2e-2, rtol=2e-2), (loss, ref)

    print("KERNEL_OK")
</pallas_src>

<mosaic_0001>
module attributes {stable_mosaic.version = 11 : i64} {
  func.func @_normalize_kernel(%arg0: i32, %arg1: memref<8x128xf32, #tpu.memory_space<vmem>>, %arg2: memref<8x128xbf16, #tpu.memory_space<vmem>>) attributes {dimension_semantics = [#tpu.dimension_semantics<parallel>], iteration_bounds = array<i64: 1>, scalar_prefetch = 0 : i64, scratch_operands = 0 : i64, tpu.core_type = #tpu.core_type<tc>, window_params = [{transform_indices = @transform_0, window_bounds = array<i64: 8, 128>}, {transform_indices = @transform_1, window_bounds = array<i64: 8, 128>}]} {
    %c0 = arith.constant 0 : index
    %c0_0 = arith.constant 0 : index
    %0 = vector.load %arg1[%c0, %c0_0] : memref<8x128xf32, #tpu.memory_space<vmem>>, vector<8x128xf32>
    %1 = arith.mulf %0, %0 : vector<8x128xf32>
    %cst = arith.constant dense<0.000000e+00> : vector<8xf32>
    %2 = vector.multi_reduction <add>, %1, %cst [1] : vector<8x128xf32> to vector<8xf32>
    %3 = vector.shape_cast %2 : vector<8xf32> to vector<8x1xf32>
    %cst_1 = arith.constant 1.000000e-24 : f32
    %4 = vector.broadcast %cst_1 : f32 to vector<8x1xf32>
    %5 = arith.maximumf %3, %4 : vector<8x1xf32>
    %6 = math.rsqrt %5 : vector<8x1xf32>
    %7 = vector.broadcast %6 : vector<8x1xf32> to vector<8x128xf32>
    %8 = arith.mulf %0, %7 : vector<8x128xf32>
    %9 = arith.truncf %8 : vector<8x128xf32> to vector<8x128xbf16>
    %c0_2 = arith.constant 0 : index
    %c0_3 = arith.constant 0 : index
    %10 = vector.load %arg2[%c0_2, %c0_3] : memref<8x128xbf16, #tpu.memory_space<vmem>>, vector<8x128xbf16>
    tpu.vector_store %arg2[%c0_2, %c0_3], %9 {strides = array<i32>} : memref<8x128xbf16, #tpu.memory_space<vmem>>, vector<8x128xbf16>,
    return
  }
  func.func @transform_0(%arg0: i32) -> (i32, i32) {
    %c0_i32 = arith.constant 0 : i32
    %c0_i32_0 = arith.constant 0 : i32
    return %arg0, %c0_i32 : i32, i32
  }
  func.func @transform_1(%arg0: i32) -> (i32, i32) {
    %c0_i32 = arith.constant 0 : i32
    %c0_i32_0 = arith.constant 0 : i32
    return %arg0, %c0_i32 : i32, i32
  }
}

</mosaic_0001>

<bundles_post_ra>
// kernel: tpu_custom_call.1
= control target key start
LH: loop header
LB: loop body
LE: loop exit
PB: predicated region body
PF: predicated region fallthrough
CT: control target
= control target key end

     0   :  { %6 = vsyncpa [#allocation3], 0  ;;  %s133_s0 = inlined_call_operand.hbm [shape: f32[8,128], index: 0, kind: input, shape index: {}]   ;;  %s134_s1 = inlined_call_operand.hbm [shape: bf16[8,128], index: 1, kind: output, shape index: {}]  }
   0x1   :  { %7 = vsyncpa [#allocation4], 0  ;;  %s97_s6 = smov [#allocation2]   ;;  %s49_s10 = scalar_lea.hbm %s133_s0, 128 }
   0x2   :  { %s14_s7 = sshll.u32 %s97_s6, 4  ;;  %p50_p0 = scmp.ne.s32.totalorder %s133_s0, %s49_s10  ;;  %s15_s7 = int_to_ptr.vmem [resolvable:$true] %s14_s7 }
   0x3   :  { %p53_p1 = scmp.lt.u32.totalorder %s49_s10, %s133_s0 }
   0x5   :  { %p55_p2 = pnand %p53_p1, %p50_p0 }
   0x7   :  { %58 = shalt.err (!%p55_p2)
}
   0x8   :  { %s59_s15 = scalar_lea.vmem %s15_s7, 128  ;;  %p64_p4 = scmp.lt.s32.totalorder %s15_s7, %s15_s7 }
   0x9   :  { %p60_p3 = scmp.ne.s32.totalorder %s15_s7, %s59_s15  ;;  %p65_p5 = scmp.lt.s32.totalorder %s59_s15, %s59_s15 }
   0xb   :  { %p66_p6 = por %p65_p5, %p64_p4 }
   0xd   :  { %p67_p7 = pnand %p66_p6, %p60_p3 }
   0xf   :  { %70 = shalt.err (!%p67_p7)
}
  0x10   :  { %17 = dma.hbm_to_vmem [thread:$0]  %s133_s0, 128, %s15_s7, [#allocation3]  }
  0x11   :  { %93 = dma.done.wait [#allocation3], 128  }
  0x12   :  { %94 = vsyncadd [#allocation3], 4294967168  ;;  %v21_v0 = vld [vmem:[#allocation2] sm:$0xff]  ;;  %s98_s18 = smov [#allocation5]  }
  0x13   :  { %v22_v1 = vmul.f32 %v21_v0, %v21_v0  ;;  %s36_s19 = sshll.u32 %s98_s18, 4  ;;  %s37_s19 = int_to_ptr.vmem [resolvable:$true] %s36_s19 }
  0x14   :  { %s71_s20 = scalar_lea.vmem %s37_s19, 64  ;;  %p76_p9 = scmp.lt.s32.totalorder %s37_s19, %s37_s19 }
  0x15   :  { %23 = vadd.xlane.f32.xlu0 %v22_v1  ;;  %p72_p8 = scmp.ne.s32.totalorder %s37_s19, %s71_s20  ;;  %p77_p10 = scmp.lt.s32.totalorder %s71_s20, %s71_s20 }
  0x17   :  { %p78_p11 = por %p77_p10, %p76_p9 }
  0x19   :  { %p79_p12 = pnand %p78_p11, %p72_p8 }
  0xa2   :  { %v24_v2 = vpop.xlane.xlu0 %23 }
  0xa3   :  { %v25_v3 = vmax.f32 %v24_v2, 1e-24 }
  0xa5   :  { %47 = vrsqrt.f32 %v25_v3 }
  0xaf   :  { %v48_v4 = vpop.eup %47 }
  0xb0   :  { %v27_v5 = vmul.f32 %v48_v4, %v21_v0 }
  0xb2   :  { %v28_v6 = vpack.c.bf16 %v27_v5, %v27_v5 }
  0xb4   :  { %29 = vst [vmem:[#allocation5] sm:$0xf] %v28_v6 }
  0xb5   :  { %82 = shalt.err (!%p79_p12)
}
  0xb6   :  { %s83_s22 = scalar_lea.hbm %s134_s1, 64 }
  0xb7   :  { %p84_p13 = scmp.ne.s32.totalorder %s134_s1, %s83_s22  ;;  %p87_p0 = scmp.lt.u32.totalorder %s83_s22, %s134_s1 }
  0xb9   :  { %p89_p1 = pnand %p87_p0, %p84_p13 }
  0xbb   :  { %92 = shalt.err (!%p89_p1)
}
  0xbc   :  { %39 = dma.vmem_to_hbm [thread:$0]  %s37_s19, 64, %s134_s1, [#allocation4]  }
  0xbd   :  { %95 = dma.done.wait [#allocation4], 64  }
  0xbe   :  { %96 = vsyncadd [#allocation4], 4294967232 }
  0xbf   :  { %43 = vsyncpa [#allocation3], 1 }
  0xc0   :  { %44 = vsyncpa [#allocation4], 1 }

</bundles_post_ra>
